<compile_context>
chip_gen: v7x
topology: tpu7x:2x2x1
jax: 0.10.0
libtpu: 0.0.40
codegen_flags: <defaults>
</compile_context>

<pallas_src>
import math
from functools import partial

import jax
import jax.numpy as jnp
from jax import lax
from jax.experimental import pallas as pl
from jax.experimental.pallas import tpu as pltpu


def _mha_kernel(x_ref, wqkv_ref, bqkv_ref, wp3_ref, bp_ref, o_ref, *,
                n_heads, head_size, seq):
    T, H, D = seq, n_heads, head_size

    # ---- fused QKV projection for this batch slab: ONE (T, C) @ (C, 3*H*D)
    #      bf16 MXU matmul, f32 accumulation, single broadcast bias add.
    x = x_ref[0]                                               # (T, C) bf16
    qkv = jnp.dot(x, wqkv_ref[...], preferred_element_type=jnp.float32)
    qkv = qkv + bqkv_ref[...]                                  # (T, 3*H*D) f32

    # ---- restack once into head-batched (3H, T, D); leading-dim slices of it
    #      are free and no lane-axis concat is needed afterwards.
    heads = jnp.stack([qkv[:, i * D:(i + 1) * D] for i in range(3 * H)], axis=0)
    heads = heads.astype(jnp.bfloat16)                         # one cast
    k, q, v = heads[:H], heads[H:2 * H], heads[2 * H:]         # (H, T, D) each

    # ---- causal additive bias (0 keep / -1e30 drop), built once and added via
    #      broadcasting (never materialized per head / per batch).
    row = lax.broadcasted_iota(jnp.int32, (T, T), 0)
    col = lax.broadcasted_iota(jnp.int32, (T, T), 1)
    bias2d = jnp.where(col <= row, 0.0, -1e30).astype(jnp.float32)

    # ---- scores: w = k @ q^T (module quirk), ONE batched-over-heads einsum.
    #      1/sqrt(D) is pre-folded into the query weights/bias in the wrapper.
    s = jnp.einsum('htd,hsd->hts', k, q,
                   preferred_element_type=jnp.float32) + bias2d
    m = jnp.max(s, axis=-1, keepdims=True)
    e = jnp.exp(s - m)
    p = e * pl.reciprocal(jnp.sum(e, axis=-1, keepdims=True), approx=True)

    # ---- attention output and per-head output projection as batched einsums;
    #      the head concat becomes a cheap leading-dim reduction.
    o = jnp.einsum('hts,hsd->htd', p.astype(jnp.bfloat16), v,
                   preferred_element_type=jnp.float32)          # (H, T, D) f32
    per_head = jnp.einsum('htd,hdc->htc', o.astype(jnp.bfloat16), wp3_ref[...],
                          preferred_element_type=jnp.float32)   # (H, T, C) f32
    proj = jnp.sum(per_head, axis=0) + bp_ref[...]              # (T, C) f32
    o_ref[...] = proj[None].astype(o_ref.dtype)


def multi_head_attention(x, params, *, n_heads, head_size):
    """x: (B, T, C) float32. params: dict of stacked per-head weights."""
    B, T, C = x.shape
    H, D = n_heads, head_size
    HD = H * D
    inv_sqrt_d = 1.0 / math.sqrt(float(D))

    # ---- pack weights once in the wrapper: (H, C, D) -> (C, H*D); fold 1/sqrt(D)
    #      into the query weights/bias; pre-cast weights to bf16.
    def pack_w(w):                                   # (H, C, D) -> (C, H*D)
        return jnp.transpose(w, (1, 0, 2)).reshape(C, HD)

    def pack_b(b):                                   # (H, 1, D) -> (1, H*D)
        return jnp.transpose(b, (1, 0, 2)).reshape(1, HD)

    wqkv = jnp.concatenate(
        [pack_w(params["wk"]),
         pack_w(params["wq"]) * inv_sqrt_d,
         pack_w(params["wv"])], axis=-1).astype(jnp.bfloat16)        # (C, 3*H*D)
    bqkv = jnp.concatenate(
        [pack_b(params["bk"]),
         pack_b(params["bq"]) * inv_sqrt_d,
         pack_b(params["bv"])], axis=-1).astype(jnp.float32)         # (1, 3*H*D)
    wp3 = params["wp"].reshape(H, D, C).astype(jnp.bfloat16)          # (H, D, C)
    bp = params["bp"].astype(jnp.float32)                             # (1, C)

    x_bf16 = x.astype(jnp.bfloat16)          # halve activation HBM->VMEM bytes

    kernel = partial(_mha_kernel, n_heads=H, head_size=D, seq=T)
    const = lambda shape: pl.BlockSpec(shape, lambda b: (0,) * len(shape))

    return pl.pallas_call(
        kernel,
        out_shape=jax.ShapeDtypeStruct((B, T, C), jnp.float32),
        grid_spec=pltpu.PrefetchScalarGridSpec(
            num_scalar_prefetch=0,
            grid=(B,),
            in_specs=[
                pl.BlockSpec((1, T, C), lambda b: (b, 0, 0)),   # x, streamed
                const((C, 3 * HD)),        # fused QKV weight (bf16, resident)
                const((1, 3 * HD)),        # fused QKV bias (f32, resident)
                const((H, D, C)),          # output-proj weight (bf16, resident)
                const((1, C)),             # output-proj bias (f32, resident)
            ],
            out_specs=pl.BlockSpec((1, T, C), lambda b: (b, 0, 0)),
        ),
        compiler_params=pltpu.CompilerParams(
            dimension_semantics=("parallel",)),
    )(x_bf16, wqkv, bqkv, wp3, bp)


def reference(x, params, *, n_heads, head_size):
    """Pure-JAX f32 reference matching the PyTorch semantics."""
    B, T, C = x.shape
    outs = []
    for h in range(n_heads):
        k = x @ params["wk"][h] + params["bk"][h]
        q = x @ params["wq"][h] + params["bq"][h]
        v = x @ params["wv"][h] + params["bv"][h]
        w = jnp.einsum("btd,bsd->bts", k, q) / math.sqrt(float(head_size))
        mask = jnp.tril(jnp.ones((T, T)))
        w = jnp.where(mask == 0, -jnp.inf, w)
        w = jax.nn.softmax(w, axis=-1)
        outs.append(w @ v)
    cat = jnp.concatenate(outs, axis=-1)
    return cat @ params["wp"] + params["bp"]


def init_params(key, *, input_size, head_size, n_heads):
    C, D, H = input_size, head_size, n_heads
    ks = jax.random.split(key, 8)
    s_in = 1.0 / math.sqrt(C)
    s_cat = 1.0 / math.sqrt(H * D)
    return {
        "wk": jax.random.uniform(ks[0], (H, C, D), jnp.float32, -s_in, s_in),
        "bk": jax.random.uniform(ks[1], (H, 1, D), jnp.float32, -s_in, s_in),
        "wq": jax.random.uniform(ks[2], (H, C, D), jnp.float32, -s_in, s_in),
        "bq": jax.random.uniform(ks[3], (H, 1, D), jnp.float32, -s_in, s_in),
        "wv": jax.random.uniform(ks[4], (H, C, D), jnp.float32, -s_in, s_in),
        "bv": jax.random.uniform(ks[5], (H, 1, D), jnp.float32, -s_in, s_in),
        "wp": jax.random.uniform(ks[6], (H * D, C), jnp.float32, -s_cat, s_cat),
        "bp": jax.random.uniform(ks[7], (1, C), jnp.float32, -s_cat, s_cat),
    }


if __name__ == "__main__":
    # small shapes consistent with the module
    B, T = 2, 8            # batch, sequence (== block_size)
    input_size = 32
    head_size = 8
    n_heads = 4

    key = jax.random.PRNGKey(0)
    kx, kp = jax.random.split(key)
    x = jax.random.normal(kx, (B, T, input_size), jnp.float32)
    params = init_params(kp, input_size=input_size, head_size=head_size,
                         n_heads=n_heads)

    mha = jax.jit(partial(multi_head_attention, n_heads=n_heads,
                          head_size=head_size))
    out = jax.block_until_ready(mha(x, params))

    ref = reference(x, params, n_heads=n_heads, head_size=head_size)
    assert out.shape == (B, T, input_size)
    # bf16 matmul operands + approx reciprocal -> compare at bf16-level tolerance
    assert jnp.allclose(out, ref, atol=2e-2, rtol=2e-2), "mismatch vs reference"

    print("KERNEL_OK")
</pallas_src>

<mosaic_0001>
module attributes {stable_mosaic.version = 11 : i64} {
  func.func @_mha_kernel(%arg0: i32, %arg1: memref<1x8x32xbf16, #tpu.memory_space<vmem>>, %arg2: memref<32x96xbf16, #tpu.memory_space<vmem>>, %arg3: memref<1x96xf32, #tpu.memory_space<vmem>>, %arg4: memref<4x8x32xbf16, #tpu.memory_space<vmem>>, %arg5: memref<1x32xf32, #tpu.memory_space<vmem>>, %arg6: memref<1x8x32xf32, #tpu.memory_space<vmem>>) attributes {dimension_semantics = [#tpu.dimension_semantics<parallel>], iteration_bounds = array<i64: 2>, scalar_prefetch = 0 : i64, scratch_operands = 0 : i64, tpu.core_type = #tpu.core_type<tc>, window_params = [{transform_indices = @transform_0, window_bounds = array<i64: 1, 8, 32>}, {pipeline_mode = #tpu.pipeline_mode<synchronous>, transform_indices = @transform_1, window_bounds = array<i64: 32, 96>}, {pipeline_mode = #tpu.pipeline_mode<synchronous>, transform_indices = @transform_2, window_bounds = array<i64: 1, 96>}, {pipeline_mode = #tpu.pipeline_mode<synchronous>, transform_indices = @transform_3, window_bounds = array<i64: 4, 8, 32>}, {pipeline_mode = #tpu.pipeline_mode<synchronous>, transform_indices = @transform_4, window_bounds = array<i64: 1, 32>}, {transform_indices = @transform_5, window_bounds = array<i64: 1, 8, 32>}]} {
    %c0 = arith.constant 0 : index
    %c0_0 = arith.constant 0 : index
    %c0_1 = arith.constant 0 : index
    %0 = vector.load %arg1[%c0, %c0_0, %c0_1] : memref<1x8x32xbf16, #tpu.memory_space<vmem>>, vector<1x8x32xbf16>
    %1 = vector.shape_cast %0 : vector<1x8x32xbf16> to vector<8x32xbf16>
    %c0_2 = arith.constant 0 : index
    %c0_3 = arith.constant 0 : index
    %2 = vector.load %arg2[%c0_2, %c0_3] : memref<32x96xbf16, #tpu.memory_space<vmem>>, vector<32x96xbf16>
    %cst = arith.constant dense<0.000000e+00> : vector<8x96xf32>
    %3 = tpu.matmul %1, %2, %cst {dimension_numbers = #tpu.dot_dimension_numbers<[1], [0], [0], [1], [0, 0, 1, 1], [], []>} : vector<8x32xbf16>, vector<32x96xbf16>, vector<8x96xf32> -> vector<8x96xf32>
    %c0_4 = arith.constant 0 : index
    %c0_5 = arith.constant 0 : index
    %4 = vector.load %arg3[%c0_4, %c0_5] : memref<1x96xf32, #tpu.memory_space<vmem>>, vector<1x96xf32>
    %5 = vector.broadcast %4 : vector<1x96xf32> to vector<8x96xf32>
    %6 = arith.addf %3, %5 : vector<8x96xf32>
    %7 = vector.extract_strided_slice %6 {offsets = [0, 0], sizes = [8, 8], strides = [1, 1]} : vector<8x96xf32> to vector<8x8xf32>
    %8 = vector.extract_strided_slice %6 {offsets = [0, 8], sizes = [8, 8], strides = [1, 1]} : vector<8x96xf32> to vector<8x8xf32>
    %9 = vector.extract_strided_slice %6 {offsets = [0, 16], sizes = [8, 8], strides = [1, 1]} : vector<8x96xf32> to vector<8x8xf32>
    %10 = vector.extract_strided_slice %6 {offsets = [0, 24], sizes = [8, 8], strides = [1, 1]} : vector<8x96xf32> to vector<8x8xf32>
    %11 = vector.extract_strided_slice %6 {offsets = [0, 32], sizes = [8, 8], strides = [1, 1]} : vector<8x96xf32> to vector<8x8xf32>
    %12 = vector.extract_strided_slice %6 {offsets = [0, 40], sizes = [8, 8], strides = [1, 1]} : vector<8x96xf32> to vector<8x8xf32>
    %13 = vector.extract_strided_slice %6 {offsets = [0, 48], sizes = [8, 8], strides = [1, 1]} : vector<8x96xf32> to vector<8x8xf32>
    %14 = vector.extract_strided_slice %6 {offsets = [0, 56], sizes = [8, 8], strides = [1, 1]} : vector<8x96xf32> to vector<8x8xf32>
    %15 = vector.extract_strided_slice %6 {offsets = [0, 64], sizes = [8, 8], strides = [1, 1]} : vector<8x96xf32> to vector<8x8xf32>
    %16 = vector.extract_strided_slice %6 {offsets = [0, 72], sizes = [8, 8], strides = [1, 1]} : vector<8x96xf32> to vector<8x8xf32>
    %17 = vector.extract_strided_slice %6 {offsets = [0, 80], sizes = [8, 8], strides = [1, 1]} : vector<8x96xf32> to vector<8x8xf32>
    %18 = vector.extract_strided_slice %6 {offsets = [0, 88], sizes = [8, 8], strides = [1, 1]} : vector<8x96xf32> to vector<8x8xf32>
    %19 = vector.shape_cast %7 : vector<8x8xf32> to vector<1x8x8xf32>
    %20 = vector.shape_cast %8 : vector<8x8xf32> to vector<1x8x8xf32>
    %21 = vector.shape_cast %9 : vector<8x8xf32> to vector<1x8x8xf32>
    %22 = vector.shape_cast %10 : vector<8x8xf32> to vector<1x8x8xf32>
    %23 = vector.shape_cast %11 : vector<8x8xf32> to vector<1x8x8xf32>
    %24 = vector.shape_cast %12 : vector<8x8xf32> to vector<1x8x8xf32>
    %25 = vector.shape_cast %13 : vector<8x8xf32> to vector<1x8x8xf32>
    %26 = vector.shape_cast %14 : vector<8x8xf32> to vector<1x8x8xf32>
    %27 = vector.shape_cast %15 : vector<8x8xf32> to vector<1x8x8xf32>
    %28 = vector.shape_cast %16 : vector<8x8xf32> to vector<1x8x8xf32>
    %29 = vector.shape_cast %17 : vector<8x8xf32> to vector<1x8x8xf32>
    %30 = vector.shape_cast %18 : vector<8x8xf32> to vector<1x8x8xf32>
    %31 = tpu.concatenate %19, %20, %21, %22, %23, %24, %25, %26, %27, %28, %29, %30 in 0 : vector<1x8x8xf32>, vector<1x8x8xf32>, vector<1x8x8xf32>, vector<1x8x8xf32>, vector<1x8x8xf32>, vector<1x8x8xf32>, vector<1x8x8xf32>, vector<1x8x8xf32>, vector<1x8x8xf32>, vector<1x8x8xf32>, vector<1x8x8xf32>, vector<1x8x8xf32> -> vector<12x8x8xf32>
    %32 = arith.truncf %31 : vector<12x8x8xf32> to vector<12x8x8xbf16>
    %33 = vector.extract_strided_slice %32 {offsets = [0, 0, 0], sizes = [4, 8, 8], strides = [1, 1, 1]} : vector<12x8x8xbf16> to vector<4x8x8xbf16>
    %34 = vector.extract_strided_slice %32 {offsets = [4, 0, 0], sizes = [4, 8, 8], strides = [1, 1, 1]} : vector<12x8x8xbf16> to vector<4x8x8xbf16>
    %35 = vector.extract_strided_slice %32 {offsets = [8, 0, 0], sizes = [4, 8, 8], strides = [1, 1, 1]} : vector<12x8x8xbf16> to vector<4x8x8xbf16>
    %36 = tpu.iota {dimensions = array<i32: 0>} : vector<8x8xi32>
    %37 = tpu.iota {dimensions = array<i32: 1>} : vector<8x8xi32>
    %38 = arith.cmpi sle, %37, %36 : vector<8x8xi32>
    %cst_6 = arith.constant 0.000000e+00 : f32
    %cst_7 = arith.constant -1.000000e+30 : f32
    %39 = vector.broadcast %cst_6 : f32 to vector<8x8xf32>
    %40 = vector.broadcast %cst_7 : f32 to vector<8x8xf32>
    %41 = arith.select %38, %39, %40 : vector<8x8xi1>, vector<8x8xf32>
    "tpu.trace_start"() <{level = 10 : i32, message = "htd,hsd->hts"}> : () -> ()
    %cst_8 = arith.constant dense<0.000000e+00> : vector<4x8x8xf32>
    %42 = tpu.matmul %33, %34, %cst_8 {dimension_numbers = #tpu.dot_dimension_numbers<[2], [2], [1], [1], [0, 0, 0, 1, 1, 1], [0], [0]>} : vector<4x8x8xbf16>, vector<4x8x8xbf16>, vector<4x8x8xf32> -> vector<4x8x8xf32>
    "tpu.trace_stop"() : () -> ()
    %43 = vector.shape_cast %41 : vector<8x8xf32> to vector<1x8x8xf32>
    %44 = vector.broadcast %43 : vector<1x8x8xf32> to vector<4x8x8xf32>
    %45 = arith.addf %42, %44 : vector<4x8x8xf32>
    %cst_9 = arith.constant dense<0xFF800000> : vector<4x8xf32>
    %46 = vector.multi_reduction <maximumf>, %45, %cst_9 [2] : vector<4x8x8xf32> to vector<4x8xf32>
    %47 = vector.shape_cast %46 : vector<4x8xf32> to vector<4x8x1xf32>
    %48 = vector.broadcast %47 : vector<4x8x1xf32> to vector<4x8x8xf32>
    %49 = arith.subf %45, %48 : vector<4x8x8xf32>
    %50 = math.exp %49 : vector<4x8x8xf32>
    %cst_10 = arith.constant dense<0.000000e+00> : vector<4x8xf32>
    %51 = vector.multi_reduction <add>, %50, %cst_10 [2] : vector<4x8x8xf32> to vector<4x8xf32>
    %52 = vector.shape_cast %51 : vector<4x8xf32> to vector<4x8x1xf32>
    %53 = tpu.reciprocal %52 {approx = true} : vector<4x8x1xf32> -> vector<4x8x1xf32>
    %54 = vector.broadcast %53 : vector<4x8x1xf32> to vector<4x8x8xf32>
    %55 = arith.mulf %50, %54 : vector<4x8x8xf32>
    %56 = arith.truncf %55 : vector<4x8x8xf32> to vector<4x8x8xbf16>
    "tpu.trace_start"() <{level = 10 : i32, message = "hts,hsd->htd"}> : () -> ()
    %cst_11 = arith.constant dense<0.000000e+00> : vector<4x8x8xf32>
    %57 = tpu.matmul %56, %35, %cst_11 {dimension_numbers = #tpu.dot_dimension_numbers<[2], [1], [1], [2], [0, 0, 0, 1, 1, 2], [0], [0]>} : vector<4x8x8xbf16>, vector<4x8x8xbf16>, vector<4x8x8xf32> -> vector<4x8x8xf32>
    "tpu.trace_stop"() : () -> ()
    %58 = arith.truncf %57 : vector<4x8x8xf32> to vector<4x8x8xbf16>
    %c0_12 = arith.constant 0 : index
    %c0_13 = arith.constant 0 : index
    %c0_14 = arith.constant 0 : index
    %59 = vector.load %arg4[%c0_12, %c0_13, %c0_14] : memref<4x8x32xbf16, #tpu.memory_space<vmem>>, vector<4x8x32xbf16>
    "tpu.trace_start"() <{level = 10 : i32, message = "htd,hdc->htc"}> : () -> ()
    %cst_15 = arith.constant dense<0.000000e+00> : vector<4x8x32xf32>
    %60 = tpu.matmul %58, %59, %cst_15 {dimension_numbers = #tpu.dot_dimension_numbers<[2], [1], [1], [2], [0, 0, 0, 1, 1, 2], [0], [0]>} : vector<4x8x8xbf16>, vector<4x8x32xbf16>, vector<4x8x32xf32> -> vector<4x8x32xf32>
    "tpu.trace_stop"() : () -> ()
    %cst_16 = arith.constant dense<0.000000e+00> : vector<8x32xf32>
    %61 = vector.multi_reduction <add>, %60, %cst_16 [0] : vector<4x8x32xf32> to vector<8x32xf32>
    %c0_17 = arith.constant 0 : index
    %c0_18 = arith.constant 0 : index
    %62 = vector.load %arg5[%c0_17, %c0_18] : memref<1x32xf32, #tpu.memory_space<vmem>>, vector<1x32xf32>
    %63 = vector.broadcast %62 : vector<1x32xf32> to vector<8x32xf32>
    %64 = arith.addf %61, %63 : vector<8x32xf32>
    %65 = vector.shape_cast %64 : vector<8x32xf32> to vector<1x8x32xf32>
    %c0_19 = arith.constant 0 : index
    %c0_20 = arith.constant 0 : index
    %c0_21 = arith.constant 0 : index
    %66 = vector.load %arg6[%c0_19, %c0_20, %c0_21] : memref<1x8x32xf32, #tpu.memory_space<vmem>>, vector<1x8x32xf32>
    tpu.vector_store %arg6[%c0_19, %c0_20, %c0_21], %65 {strides = array<i32>} : memref<1x8x32xf32, #tpu.memory_space<vmem>>, vector<1x8x32xf32>,
    return
  }
  func.func @transform_0(%arg0: i32) -> (i32, i32, i32) {
    %c0_i32 = arith.constant 0 : i32
    %c0_i32_0 = arith.constant 0 : i32
    %c0_i32_1 = arith.constant 0 : i32
    return %arg0, %c0_i32, %c0_i32_0 : i32, i32, i32
  }
  func.func @transform_1(%arg0: i32) -> (i32, i32) {
    %c0_i32 = arith.constant 0 : i32
    %c0_i32_0 = arith.constant 0 : i32
    %c0_i32_1 = arith.constant 0 : i32
    return %c0_i32, %c0_i32_0 : i32, i32
  }
  func.func @transform_2(%arg0: i32) -> (i32, i32) {
    %c0_i32 = arith.constant 0 : i32
    %c0_i32_0 = arith.constant 0 : i32
    %c0_i32_1 = arith.constant 0 : i32
    return %c0_i32, %c0_i32_0 : i32, i32
  }
  func.func @transform_3(%arg0: i32) -> (i32, i32, i32) {
    %c0_i32 = arith.constant 0 : i32
    %c0_i32_0 = arith.constant 0 : i32
    %c0_i32_1 = arith.constant 0 : i32
    %c0_i32_2 = arith.constant 0 : i32
    return %c0_i32, %c0_i32_0, %c0_i32_1 : i32, i32, i32
  }
  func.func @transform_4(%arg0: i32) -> (i32, i32) {
    %c0_i32 = arith.constant 0 : i32
    %c0_i32_0 = arith.constant 0 : i32
    %c0_i32_1 = arith.constant 0 : i32
    return %c0_i32, %c0_i32_0 : i32, i32
  }
  func.func @transform_5(%arg0: i32) -> (i32, i32, i32) {
    %c0_i32 = arith.constant 0 : i32
    %c0_i32_0 = arith.constant 0 : i32
    %c0_i32_1 = arith.constant 0 : i32
    return %arg0, %c0_i32, %c0_i32_0 : i32, i32, i32
  }
}

</mosaic_0001>

<bundles_post_ra>
// kernel: multi_head_attention.1
= control target key start
LH: loop header
LB: loop body
LE: loop exit
PB: predicated region body
PF: predicated region fallthrough
CT: control target
= control target key end

     0   :  { %10 = vsyncpa [#allocation3], 0  ;;  %s1571_s0 = inlined_call_operand.vmem [shape: bf16[2,8,32], index: 0, kind: input, shape index: {}]   ;;  %s1572_s1 = inlined_call_operand.vmem [shape: bf16[32,96], index: 1, kind: input, shape index: {}]   ;;  %s1573_s2 = inlined_call_operand.vmem [shape: f32[1,96], index: 2, kind: input, shape index: {}]   ;;  %s1574_s3 = inlined_call_operand.vmem [shape: bf16[4,8,32], index: 3, kind: input, shape index: {}]   ;;  %s1575_s4 = inlined_call_operand.vmem [shape: f32[1,32], index: 4, kind: input, shape index: {}]   ;;  %s1576_s5 = inlined_call_operand.hbm [shape: f32[2,8,32], index: 5, kind: output, shape index: {}]  }
   0x1   :  { %12 = vsyncpa [#allocation3 + $0x1], 0  ;;  %s1354_s18 = smov 0   ;;  %s1356_s19 = smov 0  }
   0x2   :  { %s1358_s20 = smov 0   ;;  %s1360_s21 = smov 0  }
   0x3 LB: > { %s1375_s22 = sadd.s32 4294967295, %s1307_s21   ;;  %s1040_s23 = sadd.s32 4294967294, %s1307_s21   ;;  %s1307_s21 = sphi %s1360_s21, %s1582_s21   ;;  %s1303_s20 = sphi %s1358_s20, %s1581_s20   ;;  %s1299_s19 = sphi %s1356_s19, %s1580_s19   ;;  %s1295_s18 = sphi %s1354_s18, %s1579_s18  }
   0x4   : > { %s1379_s24 = sadd.s32 1, %s1307_s21   ;;  %s135_s25 = sadd.s32 1, %s1303_s20 }
   0x5   : > { %s132_s26 = ssub.s32 %s1307_s21, %s1379_s24  ;;  %p145_p0 = scmp.ne.s32.totalorder %s1303_s20, %s1299_s19 }
   0x6   : > { %p133_p1 = scmp.eq.s32.totalorder %s132_s26, 0  ;;  %p146_p2 = scmp.eq.s32.totalorder %s1375_s22, 1 }
   0x7   : > { %p151_p3 = scmp.ne.s32.totalorder %s1299_s19, %s1295_s18  ;;  %p152_p4 = scmp.eq.s32.totalorder %s1040_s23, 1 }
   0x8   : > { %s1390_s27 = scalar_select %p133_p1, %s1303_s20, %s135_s25  }
   0x9   : > { %p1392_p5 = por %p146_p2, %p145_p0  ;;  %p1396_p6 = por %p152_p4, %p151_p3 }
   0xa   : > { %p1043_p7 = scmp.ge.s32.totalorder %s1307_s21, 1  ;;  %p189_p8 = scmp.lt.s32.totalorder %s1307_s21, 3 }
   0xc   : > { %p190_p9 = pnand %p1043_p7, %p189_p8 }
   0xd   : > { %v1227_v0 = vld [vmem:[%s1572_s1] sm:$0xff] (!%p190_p9)   ;;  %v1309_v1 = vmov (!%p190_p9), 0.0   ;;  %v1228_v2 = vld [vmem:[%s1572_s1 + $0x8] sm:$0xff] (!%p190_p9)   ;;  %vm1310_vm0 = vmmov (!%p190_p9), 0   ;;  %p216_p10 = scmp.lt.s32.totalorder (!%p190_p9), %s1375_s22, 1  ;;  %vm245_vm1 = vcmask (!%p190_p9), 261120   ;;  %v335_v29 = vlaneseq (!%p190_p9) }
   0xe   : > { %193 = sbr.rel (%p190_p9) target bundleno = 1352 (0x548), region = 40  ;;  %1094 = vmatprep.subr.bf16.mxu0 (!%p190_p9), %v1309_v1  ;;  %1102 = vmatprep.subr.bf16.mxu1 (!%p190_p9), %v1309_v1  ;;  %v1046_v4 = vld [vmem:[%s1573_s2] ss:$0 sm:$0xff] (!%p190_p9)  ;;  %s1311_s16 = smov (!%p190_p9), 80   ;;  %vm341_vm2 = vcmask (!%p190_p9), 64512   ;;  %vm577_vm4 = vcmask (!%p190_p9), 1043456  }
   0xf   : > { %1095 = vmatpush3.bf16.msra.mxu0 (!%p190_p9), %v1227_v0  ;;  %1098 = vmatprep.mubr.msk.bf16.mxu0 (!%p190_p9), %vm1310_vm0, %v1309_v1  ;;  %s1312_s17 = smov (!%p190_p9), 96   ;;  %s1313_s23 = smov (!%p190_p9), 120   ;;  %v336_v30 = vshrl.u32 (!%p190_p9), %v335_v29, 7  ;;  %v338_v31 = vand.u32 (!%p190_p9), 127, %v335_v29  ;;  %v1318_v32 = vmov (!%p190_p9), -1e+30  }
  0x10   : > { %1096 = vmatprep.subr.bf16.mxu0 (!%p190_p9), %v1309_v1  ;;  %1104 = vmatprep.mubr.msk.bf16.mxu1 (!%p190_p9), %vm1310_vm0, %v1309_v1  ;;  %s1314_s25 = smov (!%p190_p9), 88   ;;  %s1315_s26 = smov (!%p190_p9), 112  }
  0x11   : > { %s1316_s30 = smov (!%p190_p9), 72   ;;  %s1317_s6 = smov (!%p190_p9), 104   ;;  %vm339_vm3 = vcmp.le.s32.totalorder (!%p190_p9), %v338_v31, %v336_v30 }
  0x12   : > { %v340_v33 = vsel (!%p190_p9), %vm339_vm3, 0.0, %v1318_v32  ;;  %s1319_s7 = smov (!%p190_p9), 56   ;;  %s1320_s8 = smov (!%p190_p9), 64  }
  0x13   : > { %1097 = vmatpush3.bf16.msra.mxu0 (!%p190_p9), %v1228_v2  ;;  %s1323_s14 = smov (!%p190_p9), [#allocation2]  }
  0x14   : > { %1108 = vmatprep.subr.bf16.mxu0 (!%p190_p9), %v1309_v1  ;;  %s1249_s15 = sshll.u32 (!%p190_p9), %s1323_s14, 4  ;;  %s1250_s15 = int_to_ptr.vmem [resolvable:$false] %s1249_s15 }
  0x15   : > { %s217_s9 = scalar_select %p216_p10, %s1375_s22, 1 }
  0x17   : > { %s1045_s10 = sshll.u32 %s217_s9, 2  ;;  %s1321_s9 = smov 48  }
  0x18   : > { %s219_s13 = scalar_lea.vmem %s1571_s0, %s1045_s10  ;;  %s1322_s10 = smov 40  }
  0x19   : > { %v221_v3 = vld [vmem:[%s219_s13] sm:$0xf] }
  0x1a   : > { %1099 = vmatmul.mubr.msk.bf16.vlgmr.msra.gmra.mrb[0].mxu0 %vm245_vm1, %v221_v3 }
  0x1b   : > { %1110 = vmatprep.mubr.msk.bf16.mxu0 %vm1310_vm0, %v1309_v1 }
  0xed   : > { %v283_v5 = vpop.f32.mrb[0].mxu0 }
  0xee   : > { %v1427_v6 = vadd.f32 %v1046_v4, %v283_v5  ;;  %v1100_v7 = vpop.f32.mrb[1].mxu0 }
  0xef   : > { %v286_v8 = vpop.f32.mrb[2].mxu0 }
  0xf0   : > { %305 = vrot.lane.b32.xlu1 %v1427_v6, %s1311_s16  ;;  %299 = vrot.lane.b32.xlu0 %v1427_v6, %s1312_s17  ;;  %v1101_v9 = vpop.f32.mrb[3].mxu0  ;;  %v323_v20 = vpack.c.bf16 %v1427_v6, %v1427_v6  ;;  %s1251_s16 = scalar_lea.vmem %s1250_s15, 256 }
  0xf4   : > { %290 = vrot.lane.b32.xlu1 %v1427_v6, %s1313_s23  ;;  %302 = vrot.lane.b32.xlu0 %v1427_v6, %s1314_s25  ;;  %s213_s25 = sand.u32 1, %s1299_s19  }
  0xf5   : > { %s968_s13 = scalar_lea.sflag [#allocation3], %s213_s25 }
  0xf8   : > { %293 = vrot.lane.b32.xlu1 %v1427_v6, %s1315_s26  ;;  %308 = vrot.lane.b32.xlu0 %v1427_v6, %s1316_s30  ;;  %s1044_s26 = sshll.u32 %s213_s25, 3 }
  0xfc   : > { %296 = vrot.lane.b32.xlu0 %v1427_v6, %s1317_s6 }
 0x162   : > { %v300_v10 = vpop.permute.xlu0 %299  ;;  %v306_v12 = vpop.permute.xlu1 %305 }
 0x163   : > { %v327_v11 = vpack.c.bf16 %v300_v10, %v300_v10  ;;  %v329_v16 = vpack.c.bf16 %v306_v12, %v306_v12 }
 0x165   : > { %v346_v13 = vsel %vm341_vm2, %v327_v11, 0  ;;  %v438_v21 = vsel %vm341_vm2, %v329_v16, 0 }
 0x166   : > { %1103 = vmatpush3.bf16.xpose.msra.mxu1 %v346_v13  ;;  %v303_v14 = vpop.permute.xlu0 %302  ;;  %v291_v18 = vpop.permute.xlu1 %290 }
 0x167   : > { %v328_v15 = vpack.c.bf16 %v303_v14, %v303_v14  ;;  %1114 = vmatprep.subr.bf16.mxu1 %v1309_v1  ;;  %v324_v23 = vpack.c.bf16 %v291_v18, %v291_v18 }
 0x169   : > { %v392_v17 = vsel %vm341_vm2, %v328_v15, 0 }
 0x16a   : > { %1109 = vmatpush3.bf16.xpose.msra.mxu0 %v392_v17  ;;  %v309_v19 = vpop.permute.xlu0 %308  ;;  %v294_v24 = vpop.permute.xlu1 %293 }
 0x16b   : > { %1120 = vmatprep.subr.bf16.mxu0 %v1309_v1  ;;  %v330_v22 = vpack.c.bf16 %v309_v19, %v309_v19  ;;  %v325_v26 = vpack.c.bf16 %v294_v24, %v294_v24 }
 0x16d   : > { %1105 = vmatmul.mubr.msk.bf16.vlgmr.msra.gmra.mrb[0].mxu1 %vm341_vm2, %v323_v20  ;;  %v484_v25 = vsel %vm341_vm2, %v330_v22, 0 }
 0x16e   : > { %1115 = vmatpush3.bf16.xpose.msra.mxu1 %v438_v21  ;;  %1116 = vmatprep.mubr.msk.bf16.mxu1 %vm1310_vm0, %v1309_v1  ;;  %v297_v27 = vpop.permute.xlu0 %296 }
 0x16f   : > { %1126 = vmatprep.subr.bf16.mxu1 %v1309_v1  ;;  %v326_v28 = vpack.c.bf16 %v297_v27, %v297_v27 }
 0x171   : > { %1111 = vmatmul.mubr.msk.bf16.vlgmr.msra.gmra.mrb[4].mxu0 %vm341_vm2, %v324_v23 }
 0x172   : > { %1121 = vmatpush3.bf16.xpose.msra.mxu0 %v484_v25  ;;  %1122 = vmatprep.mubr.msk.bf16.mxu0 %vm1310_vm0, %v1309_v1 }
 0x173   : > { %1132 = vmatprep.subr.bf16.mxu0 %v1309_v1 }
 0x175   : > { %1117 = vmatmul.mubr.msk.bf16.vlgmr.msra.gmra.mrb[4].mxu1 %vm341_vm2, %v325_v26 }
 0x176   : > { %1128 = vmatprep.mubr.msk.bf16.mxu1 %vm1310_vm0, %v1309_v1 }
 0x179   : > { %1123 = vmatmul.mubr.msk.bf16.vlgmr.msra.gmra.mrb[8].mxu0 %vm341_vm2, %v326_v28 }
 0x17a   : > { %1134 = vmatprep.mubr.msk.bf16.mxu0 %vm1310_vm0, %v1309_v1 }
 0x240   : > { %v382_v34 = vpop.f32.mrb[0].mxu1 }
 0x241   : > { %v383_v35 = vadd.f32 %v382_v34, %v340_v33  ;;  %v1106_v36 = vpop.f32.mrb[1].mxu1 }
 0x242   : > { %v385_v37 = vpop.f32.mrb[2].mxu1 }
 0x243   : > { %v1107_v38 = vpop.f32.mrb[3].mxu1  ;;  %v526_v39 = vsel %vm341_vm2, %v383_v35, -inf  ;;  %v763_v37 = vld [vmem:[%s1574_s3] sm:$0xf] }
 0x244   : > { %527 = vmax.xlane.f32.xlu1 %v526_v39  ;;  %v428_v40 = vpop.f32.mrb[4].mxu0 }
 0x245   : > { %v429_v41 = vadd.f32 %v428_v40, %v340_v33  ;;  %v1112_v42 = vpop.f32.mrb[5].mxu0 }
 0x246   : > { %v431_v43 = vpop.f32.mrb[6].mxu0 }
 0x247   : > { %v1113_v44 = vpop.f32.mrb[7].mxu0  ;;  %v529_v45 = vsel %vm341_vm2, %v429_v41, -inf }
 0x248   : > { %v474_v46 = vpop.f32.mrb[4].mxu1  ;;  %530 = vmax.xlane.f32.xlu0 %v529_v45  ;;  %v764_v45 = vld [vmem:[%s1574_s3 + $0x4] sm:$0xf] }
 0x249   : > { %v475_v47 = vadd.f32 %v474_v46, %v340_v33  ;;  %v1118_v48 = vpop.f32.mrb[5].mxu1  ;;  %v817_v46 = vsel %vm577_vm4, %v764_v45, 0 }
 0x24a   : > { %v477_v49 = vpop.f32.mrb[6].mxu1 }
 0x24b   : > { %v1119_v50 = vpop.f32.mrb[7].mxu1  ;;  %v532_v51 = vsel %vm341_vm2, %v475_v47, -inf }
 0x24c   : > { %533 = vmax.xlane.f32.xlu0 %v532_v51  ;;  %v520_v52 = vpop.f32.mrb[8].mxu0 }
 0x24d   : > { %v521_v53 = vadd.f32 %v520_v52, %v340_v33  ;;  %v1124_v54 = vpop.f32.mrb[9].mxu0 }
 0x24e   : > { %v523_v55 = vpop.f32.mrb[10].mxu0 }
 0x24f   : > { %v1125_v56 = vpop.f32.mrb[11].mxu0  ;;  %v535_v57 = vsel %vm341_vm2, %v521_v53, -inf }
 0x250   : > { %536 = vmax.xlane.f32.xlu1 %v535_v57 }
 0x261   : > { %314 = vrot.lane.b32.xlu1 %v1427_v6, %s1319_s7  ;;  %s1064_s7 = sshll.u32 %s1375_s22, 7 }
 0x262   : > { %311 = vrot.lane.b32.xlu0 %v1427_v6, %s1320_s8  ;;  %s215_s8 = scalar_lea.vmem [#allocation2], %s1044_s26  ;;  %s1528_s12 = scalar_lea.hbm %s1576_s5, %s1064_s7 }
 0x2d1   : > { %v528_v58 = vpop.xlane.xlu1 %527 }
 0x2d2   : > { %v538_v59 = vsub.f32 %v383_v35, %v528_v58 }
 0x2d4   : > { %v542_v60 = vmul.f32 1.442695, %v538_v59 }
 0x2d5   : > { %v531_v61 = vpop.xlane.xlu0 %530 }
 0x2d6   : > { %1229 = vpow2.f32 %v542_v60  ;;  %v539_v62 = vsub.f32 %v429_v41, %v531_v61  ;;  %v771_v41 = vsel %vm577_vm4, %v763_v37, 0 }
 0x2d8   : > { %v544_v63 = vmul.f32 1.442695, %v539_v62 }
 0x2d9   : > { %v534_v0 = vpop.xlane.xlu0 %533 }
 0x2da   : > { %1231 = vpow2.f32 %v544_v63  ;;  %v540_v2 = vsub.f32 %v475_v47, %v534_v0  ;;  %v765_v47 = vld [vmem:[%s1574_s3 + $0x8] sm:$0xf] }
 0x2db   : > { %v863_v51 = vsel %vm577_vm4, %v765_v47, 0 }
 0x2dc   : > { %v546_v3 = vmul.f32 1.442695, %v540_v2 }
 0x2dd   : > { %v312_v4 = vpop.permute.xlu0 %311  ;;  %v537_v5 = vpop.xlane.xlu1 %536 }
 0x2de   : > { %1233 = vpow2.f32 %v546_v3  ;;  %v331_v7 = vpack.c.bf16 %v312_v4, %v312_v4  ;;  %v541_v8 = vsub.f32 %v521_v53, %v537_v5  ;;  %v766_v53 = vld [vmem:[%s1574_s3 + $0xc] sm:$0xf] }
 0x2df   : > { %v909_v58 = vsel %vm577_vm4, %v766_v53, 0 }
 0x2e0   : > { %v1230_v9 = vpop.eup %1229  ;;  %v579_v10 = vsel %vm577_vm4, %v331_v7, 0  ;;  %v548_v11 = vmul.f32 1.442695, %v541_v8 }
 0x2e1   : > { %1127 = vmatpush3.bf16.msra.mxu1 %v579_v10  ;;  %v315_v12 = vpop.permute.xlu1 %314  ;;  %v550_v13 = vsel %vm341_vm2, %v1230_v9, 0.0 }
 0x2e2   : > { %1235 = vpow2.f32 %v548_v11  ;;  %v332_v14 = vpack.c.bf16 %v315_v12, %v315_v12  ;;  %551 = vadd.xlane.f32.xlu0 %v550_v13  ;;  %1138 = vmatprep.subr.bf16.mxu1 %v1309_v1 }
 0x2e4   : > { %v1232_v15 = vpop.eup %1231  ;;  %v625_v16 = vsel %vm577_vm4, %v332_v14, 0 }
 0x2e5   : > { %1133 = vmatpush3.bf16.msra.mxu0 %v625_v16  ;;  %v553_v17 = vsel %vm341_vm2, %v1232_v15, 0.0 }
 0x2e6   : > { %554 = vadd.xlane.f32.xlu1 %v553_v17  ;;  %1144 = vmatprep.subr.bf16.mxu0 %v1309_v1 }
 0x2e8   : > { %v1234_v18 = vpop.eup %1233 }
 0x2e9   : > { %v556_v19 = vsel %vm341_vm2, %v1234_v18, 0.0 }
 0x2ea   : > { %557 = vadd.xlane.f32.xlu0 %v556_v19 }
 0x2ec   : > { %v1236_v20 = vpop.eup %1235 }
 0x2ed   : > { %v559_v21 = vsel %vm341_vm2, %v1236_v20, 0.0 }
 0x2ee   : > { %560 = vadd.xlane.f32.xlu1 %v559_v21 }
 0x2ff   : > { %317 = vrot.lane.b32.xlu1 %v1427_v6, %s1321_s9  ;;  %s981_s9 = sshll.u32 %s215_s8, 4  ;;  %s1530_s9 = int_to_ptr.vmem [resolvable:$true] %s981_s9 }
 0x300   : > { %320 = vrot.lane.b32.xlu0 %v1427_v6, %s1322_s10  ;;  %s1245_s22 = scalar_lea.vmem %s1530_s9, 128  ;;  %p1252_p0 = scmp.lt.s32.totalorder %s1530_s9, %s1250_s15 }
 0x301   : > { %p1246_p11 = scmp.ne.s32.totalorder %s1530_s9, %s1245_s22  ;;  %p1253_p1 = scmp.lt.s32.totalorder %s1251_s16, %s1245_s22 }
 0x303   : > { %p1247_p12 = pnand %p1246_p11, %p1392_p5  ;;  %p1254_p2 = por %p1253_p1, %p1252_p0 }
 0x305   : > { %p1248_p13 = pneg %p1247_p12 }
 0x307   : > { %p1255_p3 = pnand %p1254_p2, %p1248_p13 }
 0x36f   : > { %v552_v22 = vpop.xlane.xlu0 %551 }
 0x370   : > { %1237 = vrcp.f32 %v552_v22 }
 0x373   : > { %v555_v23 = vpop.xlane.xlu1 %554 }
 0x374   : > { %1239 = vrcp.f32 %v555_v23 }
 0x377   : > { %v558_v24 = vpop.xlane.xlu0 %557 }
 0x378   : > { %1241 = vrcp.f32 %v558_v24 }
 0x37a   : > { %v1238_v25 = vpop.eup %1237 }
 0x37b   : > { %v566_v26 = vmul.f32 %v1238_v25, %v1230_v9  ;;  %v561_v27 = vpop.xlane.xlu1 %560  ;;  %v321_v28 = vpop.permute.xlu0 %320 }
 0x37c   : > { %1243 = vrcp.f32 %v561_v27  ;;  %v334_v32 = vpack.c.bf16 %v321_v28, %v321_v28  ;;  %v1062_v27 = vld [vmem:[%s1575_s4] ss:$0 sm:$0xff] }
 0x37d   : > { %v570_v29 = vpack.c.bf16 %v566_v26, %v566_v26 }
 0x37e   : > { %v1240_v30 = vpop.eup %1239  ;;  %v717_v39 = vsel %vm577_vm4, %v334_v32, 0 }
 0x37f   : > { %v567_v31 = vmul.f32 %v1240_v30, %v1232_v15  ;;  %1129 = vmatmul.mubr.msk.bf16.vlgmr.msra.gmra.mrb[8].mxu1 %vm341_vm2, %v570_v29  ;;  %v318_v33 = vpop.permute.xlu1 %317 }
 0x380   : > { %v333_v34 = vpack.c.bf16 %v318_v33, %v318_v33  ;;  %1140 = vmatprep.mubr.msk.bf16.mxu1 %vm1310_vm0, %v1309_v1 }
 0x381   : > { %v571_v6 = vpack.c.bf16 %v567_v31, %v567_v31 }
 0x382   : > { %v1242_v35 = vpop.eup %1241  ;;  %v671_v36 = vsel %vm577_vm4, %v333_v34, 0 }
 0x383   : > { %v568_v38 = vmul.f32 %v1242_v35, %v1234_v18  ;;  %1135 = vmatmul.mubr.msk.bf16.vlgmr.msra.gmra.mrb[12].mxu0 %vm341_vm2, %v571_v6  ;;  %1139 = vmatpush3.bf16.msra.mxu1 %v671_v36 }
 0x384   : > { %1145 = vmatpush3.bf16.msra.mxu0 %v717_v39  ;;  %1146 = vmatprep.mubr.msk.bf16.mxu0 %vm1310_vm0, %v1309_v1 }
 0x385   : > { %v572_v40 = vpack.c.bf16 %v568_v38, %v568_v38  ;;  %1150 = vmatprep.subr.bf16.mxu1 %v1309_v1  ;;  %1156 = vmatprep.subr.bf16.mxu0 %v1309_v1 }
 0x386   : > { %v1244_v42 = vpop.eup %1243 }
 0x387   : > { %v569_v43 = vmul.f32 %v1244_v42, %v1236_v20  ;;  %1141 = vmatmul.mubr.msk.bf16.vlgmr.msra.gmra.mrb[12].mxu1 %vm341_vm2, %v572_v40 }
 0x388   : > { %1151 = vmatpush3.bf16.msra.mxu1 %v771_v41  ;;  %1152 = vmatprep.mubr.msk.bf16.mxu1 %vm1310_vm0, %v1309_v1 }
 0x389   : > { %v573_v44 = vpack.c.bf16 %v569_v43, %v569_v43  ;;  %1162 = vmatprep.subr.bf16.mxu1 %v1309_v1 }
 0x38b   : > { %1147 = vmatmul.mubr.msk.bf16.vlgmr.msra.gmra.mrb[16].mxu0 %vm341_vm2, %v573_v44 }
 0x38c   : > { %1158 = vmatprep.mubr.msk.bf16.mxu0 %vm1310_vm0, %v1309_v1  ;;  %1157 = vmatpush3.bf16.msra.mxu0 %v817_v46 }
 0x38d   : > { %1168 = vmatprep.subr.bf16.mxu0 %v1309_v1 }
 0x452   : > { %v615_v48 = vpop.f32.mrb[8].mxu1 }
 0x453   : > { %v759_v49 = vpack.c.bf16 %v615_v48, %v615_v48  ;;  %v1130_v50 = vpop.f32.mrb[9].mxu1 }
 0x454   : > { %v618_v52 = vpop.f32.mrb[10].mxu1 }
 0x455   : > { %v1131_v54 = vpop.f32.mrb[11].mxu1  ;;  %1153 = vmatmul.mubr.msk.bf16.vlgmr.msra.gmra.mrb[16].mxu1 %vm341_vm2, %v759_v49 }
 0x456   : > { %v661_v55 = vpop.f32.mrb[12].mxu0  ;;  %1163 = vmatpush3.bf16.msra.mxu1 %v863_v51  ;;  %1164 = vmatprep.mubr.msk.bf16.mxu1 %vm1310_vm0, %v1309_v1 }
 0x457   : > { %v760_v56 = vpack.c.bf16 %v661_v55, %v661_v55  ;;  %v1136_v57 = vpop.f32.mrb[13].mxu0 }
 0x458   : > { %v664_v59 = vpop.f32.mrb[14].mxu0 }
 0x459   : > { %v1137_v60 = vpop.f32.mrb[15].mxu0  ;;  %1159 = vmatmul.mubr.msk.bf16.vlgmr.msra.gmra.mrb[20].mxu0 %vm341_vm2, %v760_v56 }
 0x45a   : > { %v707_v61 = vpop.f32.mrb[12].mxu1  ;;  %1169 = vmatpush3.bf16.msra.mxu0 %v909_v58  ;;  %1170 = vmatprep.mubr.msk.bf16.mxu0 %vm1310_vm0, %v1309_v1 }
 0x45b   : > { %v761_v62 = vpack.c.bf16 %v707_v61, %v707_v61  ;;  %v1142_v63 = vpop.f32.mrb[13].mxu1 }
 0x45c   : > { %v710_v0 = vpop.f32.mrb[14].mxu1 }
 0x45d   : > { %v1143_v2 = vpop.f32.mrb[15].mxu1  ;;  %1165 = vmatmul.mubr.msk.bf16.vlgmr.msra.gmra.mrb[20].mxu1 %vm341_vm2, %v761_v62 }
 0x45e   : > { %v753_v3 = vpop.f32.mrb[16].mxu0 }
 0x45f   : > { %v762_v4 = vpack.c.bf16 %v753_v3, %v753_v3  ;;  %v1148_v5 = vpop.f32.mrb[17].mxu0 }
 0x460   : > { %v756_v7 = vpop.f32.mrb[18].mxu0 }
 0x461   : > { %v1149_v8 = vpop.f32.mrb[19].mxu0  ;;  %1171 = vmatmul.mubr.msk.bf16.vlgmr.msra.gmra.mrb[24].mxu0 %vm341_vm2, %v762_v4 }
 0x528   : > { %v807_v9 = vpop.f32.mrb[16].mxu1 }
 0x529   : > { %v1154_v10 = vpop.f32.mrb[17].mxu1  ;;  %v951_v1 = vsel %vm245_vm1, %v807_v9, 0.0 }
 0x52a   : > { %v810_v11 = vpop.f32.mrb[18].mxu1 }
 0x52b   : > { %v1155_v12 = vpop.f32.mrb[19].mxu1 }
 0x52c   : > { %v853_v13 = vpop.f32.mrb[20].mxu0 }
 0x52d   : > { %v952_v14 = vsel %vm245_vm1, %v853_v13, 0.0  ;;  %v1160_v15 = vpop.f32.mrb[21].mxu0 }
 0x52e   : > { %v953_v16 = vadd.f32 %v952_v14, %v951_v1  ;;  %v856_v17 = vpop.f32.mrb[22].mxu0 }
 0x52f   : > { %v1161_v18 = vpop.f32.mrb[23].mxu0 }
 0x530   : > { %v899_v19 = vpop.f32.mrb[20].mxu1 }
 0x531   : > { %v954_v20 = vsel %vm245_vm1, %v899_v19, 0.0  ;;  %v1166_v21 = vpop.f32.mrb[21].mxu1 }
 0x532   : > { %v955_v22 = vadd.f32 %v954_v20, %v953_v16  ;;  %v902_v23 = vpop.f32.mrb[22].mxu1 }
 0x533   : > { %v1167_v24 = vpop.f32.mrb[23].mxu1 }
 0x534   : > { %v945_v25 = vpop.f32.mrb[24].mxu0 }
 0x535   : > { %v956_v26 = vsel %vm245_vm1, %v945_v25, 0.0  ;;  %v1172_v28 = vpop.f32.mrb[25].mxu0 }
 0x536   : > { %v957_v29 = vadd.f32 %v956_v26, %v955_v22  ;;  %v948_v30 = vpop.f32.mrb[26].mxu0 }
 0x537   : > { %v1173_v31 = vpop.f32.mrb[27].mxu0 }
 0x538   : > { %v965_v32 = vadd.f32 %v1062_v27, %v957_v29 }
 0x53a   : > { %966 = vst.msk [vmem:[%s215_s8] sm:$0xff] %vm245_vm1, %v965_v32 }
 0x53b   : > { %1258 = shalt.err (!%p1255_p3)
}
 0x53c   : > { %s1259_s17 = scalar_lea.hbm %s1528_s12, 128  ;;  %s1263_s26 = scalar_lea.hbm %s1576_s5, 256 }
 0x53d   : > { %p1260_p4 = scmp.ne.s32.totalorder %s1528_s12, %s1259_s17  ;;  %p1264_p9 = scmp.lt.u32.totalorder %s1528_s12, %s1576_s5 }
 0x53e   : > { %p1265_p10 = scmp.lt.u32.totalorder %s1263_s26, %s1259_s17  ;;  %p1267_p12 = scmp.lt.u32.totalorder %s1259_s17, %s1528_s12 }
 0x53f   : > { %p1261_p7 = pnand %p1260_p4, %p1392_p5 }
 0x540   : > { %p1266_p11 = por %p1265_p10, %p1264_p9 }
 0x541   : > { %p1262_p8 = pneg %p1261_p7 }
 0x542   : > { %p1268_p13 = por %p1267_p12, %p1266_p11 }
 0x544   : > { %p1269_p0 = pnand %p1268_p13, %p1262_p8 }
 0x546   : > { %1272 = shalt.err (!%p1269_p0)
}
 0x547   : > { %1174 = dma.vmem_to_hbm [thread:$0]  (%p1392_p5), %s1530_s9, 128, %s1528_s12, %s968_s13  }
 0x548 PF: > { %p1180_p1 = scmp.ge.s32.totalorder %s1307_s21, 2  ;;  %s993_s7 = sand.u32 1, %s1295_s18  }
 0x549   : > { %s994_s8 = scalar_lea.sflag [#allocation3], %s993_s7 }
 0x54a   : > { %p1177_p2 = pnand %p1180_p1, %p1396_p6 }
 0x54c   : > { %1290 = dma.done.wait (!%p1177_p2), %s994_s8, 128  }
 0x54d   : > { %1292 = vsyncadd (!%p1177_p2), %s994_s8, 4294967168  ;;  %p15_p3 = scmp.ge.s32.totalorder %s1379_s24, 4   ;;  %s1579_s18 = smov %s1299_s19 }
 0x54e   : > { %s1580_s19 = smov %s1303_s20  ;;  %s1581_s20 = smov %s1390_s27 }
 0x54f   : > { %s1582_s21 = smov %s1379_s24  ;;  %17 = sbr.rel (!%p15_p3) target bundleno = 3 (0x3), region = 75 }
 0x556   :  { %999 = vsyncpa [#allocation3], 1 }
 0x557   :  { %1001 = vsyncpa [#allocation3 + $0x1], 1 }

</bundles_post_ra>
